<compile_context>
chip_gen: v7x
topology: tpu7x:2x2x1
jax: 0.10.0
libtpu: 0.0.40
codegen_flags: <defaults>
</compile_context>

<pallas_src>
import functools

import jax
import jax.numpy as jnp
from jax.experimental import pallas as pl
from jax.experimental.pallas import tpu as pltpu

BN_EPS = 1e-5     # nn.BatchNorm1d default eps
L2_EPS = 1e-12    # F.normalize default eps
LANE = 128        # vreg lane width  -> feature dims padded to multiples of this
SUBLANE = 8       # vreg sublane width -> batch padded / tiled at this granule


def _round_up(x, m):
    return (x + m - 1) // m * m


def _vmem_budget_bytes():
    """Generation-aware VMEM budget: ~5/8 of physical (v5e/v6e: 128 MiB, v7x: 64 MiB)."""
    try:
        cap = pltpu.get_tpu_info().vmem_capacity_bytes
    except Exception:
        cap = 64 * 1024 * 1024  # conservative fallback (v7x-sized)
    return int(min(cap * 5 // 8, 96 * 1024 * 1024))


def _pick_batch_tile(n_p, d_in_p, hid_p, d_out_p, budget):
    """Largest SUBLANE-multiple batch tile whose streamed buffers + resident weights fit
    the VMEM budget, capped at 1024 rows, preferring >=2 tiles (v7x megacore)."""
    # Resident operands single-buffered (pl.Buffered(1)): w1/w2 bf16, BN row vectors f32.
    weight_bytes = 2 * (d_in_p * hid_p + hid_p * d_out_p) + 4 * (2 * hid_p + d_out_p)
    # Double-buffered streamed x (bf16) / out (f32) tiles + live f32/bf16 intermediates
    # (h f32, h bf16, y f32) per row.
    per_row = 2 * 2 * d_in_p + 2 * 4 * d_out_p + 6 * hid_p + 4 * d_out_p
    tn = (budget - weight_bytes) // max(per_row, 1)
    tn = min(1024, max(SUBLANE, tn // SUBLANE * SUBLANE))
    tn = min(tn, n_p)
    # Prefer >= 2 batch tiles so the "parallel" axis can use both v7x TensorCores.
    if n_p > SUBLANE and pl.cdiv(n_p, tn) < 2:
        tn = max(SUBLANE, _round_up(pl.cdiv(n_p, 2), SUBLANE))
    # TODO(synk): if weight_bytes alone nears ~half the budget (huge hidden dims on
    # v7x's 64 MiB), tile the hidden dim inside pass 2 instead of materializing full h.
    return tn


def _resident_spec(shape):
    """Constant index_map -> DMA'd once; single-buffered to halve resident VMEM."""
    index_map = lambda i: (0,) * len(shape)
    try:
        return pl.BlockSpec(shape, index_map, pipeline_mode=pl.Buffered(buffer_count=1))
    except (AttributeError, TypeError):   # BlockSpec without pipeline_mode support
        return pl.BlockSpec(shape, index_map)


# ---------------- Pass 1: Linear1 + per-tile partial BN statistics ----------------
def _stats_kernel(x_ref, w1_ref, sum_ref, ssq_ref, *, tile_rows, n_valid):
    # Linear1 with bf16 MXU feeds and f32 accumulation.  b1 is intentionally omitted:
    # training-mode BatchNorm subtracts the batch mean, which cancels it exactly.
    h = jnp.dot(x_ref[...], w1_ref[...], preferred_element_type=jnp.float32)
    # Zero rows beyond the true batch (tail-tile padding / stale VMEM contents).
    row = (pl.program_id(0) * tile_rows
           + jax.lax.broadcasted_iota(jnp.int32, (tile_rows, 1), 0))
    h = jnp.where(row < n_valid, h, 0.0)
    # Column sums on the MXU (matvec) instead of an XLU sublane reduction.
    ones = jnp.ones((1, tile_rows), jnp.float32)
    sum_ref[...] = jnp.dot(ones, h, preferred_element_type=jnp.float32)[None]
    ssq_ref[...] = jnp.dot(ones, h * h, preferred_element_type=jnp.float32)[None]


# ---------- Pass 2: Linear1 -> fused BN affine -> ReLU -> Linear2 -> L2 normalize ----------
def _mlp_kernel(x_ref, w1_ref, scale_ref, shift_ref, w2_ref, b2_ref, o_ref):
    # Linear1 (bf16 MXU feeds, f32 accumulate); b1 omitted — BN cancels it.
    h = jnp.dot(x_ref[...], w1_ref[...], preferred_element_type=jnp.float32)
    # BatchNorm1d collapsed to a single FMA (scale/shift precomputed), then ReLU.
    h = jnp.maximum(h * scale_ref[...] + shift_ref[...], 0.0)
    # Linear2, again feeding the MXU bf16.
    y = jnp.dot(h.astype(jnp.bfloat16), w2_ref[...],
                preferred_element_type=jnp.float32) + b2_ref[...]
    # F.normalize: x * rsqrt(max(||x||^2, eps^2)) -> EUP rsqrt, no VALU divide.
    # Zero-padded output lanes are exactly zero, so they don't bias the norm.
    ssq = jnp.sum(y * y, axis=-1, keepdims=True)
    o_ref[...] = (y * jax.lax.rsqrt(jnp.maximum(ssq, L2_EPS * L2_EPS))).astype(o_ref.dtype)


def prepare_params(params):
    """Pad feature dims to 128 lanes and cast MXU feeds to bf16 ONCE (not per call)."""
    w1, gamma, beta, w2, b2 = (params["w1"], params["gamma"], params["beta"],
                               params["w2"], params["b2"])
    d_in, hid = w1.shape
    d_out = w2.shape[1]
    d_in_p, hid_p, d_out_p = (_round_up(d_in, LANE), _round_up(hid, LANE),
                              _round_up(d_out, LANE))
    f32, bf16 = jnp.float32, jnp.bfloat16
    w1p = jnp.zeros((d_in_p, hid_p), bf16).at[:d_in, :hid].set(w1.astype(bf16))
    w2p = jnp.zeros((hid_p, d_out_p), bf16).at[:hid, :d_out].set(w2.astype(bf16))
    gp = jnp.zeros((1, hid_p), f32).at[:, :hid].set(gamma.reshape(1, -1).astype(f32))
    betap = jnp.zeros((1, hid_p), f32).at[:, :hid].set(beta.reshape(1, -1).astype(f32))
    b2p = jnp.zeros((1, d_out_p), f32).at[:, :d_out].set(b2.reshape(1, -1).astype(f32))
    # NOTE: b1 is deliberately not used by the kernels — training-mode BatchNorm
    # subtracts the batch mean, which cancels the Linear1 bias exactly.
    return {"w1": w1p, "w2": w2p, "gamma": gp, "beta": betap, "b2": b2p,
            "dims": (d_in, hid, d_out), "padded": (d_in_p, hid_p, d_out_p)}


def mlp_forward(x, prep):
    """x: (N, input_dim) float32. prep: dict from prepare_params."""
    d_in, hid, d_out = prep["dims"]
    d_in_p, hid_p, d_out_p = prep["padded"]
    n = x.shape[0]
    n_p = _round_up(n, SUBLANE)

    f32, bf16 = jnp.float32, jnp.bfloat16
    if n_p == n and d_in_p == d_in:
        xp = x.astype(bf16)                      # no materialized padding copy
    else:
        xp = jnp.zeros((n_p, d_in_p), bf16).at[:n, :d_in].set(x.astype(bf16))

    budget = _vmem_budget_bytes()
    tn = _pick_batch_tile(n_p, d_in_p, hid_p, d_out_p, budget)
    num_tiles = pl.cdiv(n_p, tn)
    grid = (num_tiles,)

    x_spec = pl.BlockSpec((tn, d_in_p), lambda i: (i, 0))

    # -------- Pass 1: per-tile partial BN statistics ("parallel" -> v7x megacore) --------
    stats_kernel = functools.partial(_stats_kernel, tile_rows=tn, n_valid=n)
    psum, pssq = pl.pallas_call(
        stats_kernel,
        out_shape=(jax.ShapeDtypeStruct((num_tiles, 1, hid_p), f32),
                   jax.ShapeDtypeStruct((num_tiles, 1, hid_p), f32)),
        grid_spec=pltpu.PrefetchScalarGridSpec(
            num_scalar_prefetch=0,
            grid=grid,
            in_specs=[x_spec, _resident_spec((d_in_p, hid_p))],
            out_specs=(pl.BlockSpec((1, 1, hid_p), lambda i: (i, 0, 0)),
                       pl.BlockSpec((1, 1, hid_p), lambda i: (i, 0, 0)))),
        compiler_params=pltpu.CompilerParams(
            dimension_semantics=("parallel",),
            vmem_limit_bytes=budget),
    )(xp, prep["w1"])

    # Training-mode BatchNorm1d: batch mean + biased variance over the TRUE batch.
    # TODO(synk): running_mean/running_var buffers are not updated (train-time stats only).
    h_sum = jnp.sum(psum, axis=0)                                   # (1, hid_p)
    h_ssq = jnp.sum(pssq, axis=0)
    mean = h_sum / n
    var = jnp.maximum(h_ssq / n - mean * mean, 0.0)                 # clamp cancellation
    scale = prep["gamma"] * jax.lax.rsqrt(var + BN_EPS)
    shift = prep["beta"] - mean * scale

    # -------- Pass 2: independent batch tiles (megacore-parallel) --------
    out_p = pl.pallas_call(
        _mlp_kernel,
        out_shape=jax.ShapeDtypeStruct((n_p, d_out_p), f32),
        grid_spec=pltpu.PrefetchScalarGridSpec(
            num_scalar_prefetch=0,
            grid=grid,
            in_specs=[x_spec,
                      _resident_spec((d_in_p, hid_p)),
                      _resident_spec((1, hid_p)), _resident_spec((1, hid_p)),
                      _resident_spec((hid_p, d_out_p)), _resident_spec((1, d_out_p))],
            out_specs=pl.BlockSpec((tn, d_out_p), lambda i: (i, 0))),
        compiler_params=pltpu.CompilerParams(
            dimension_semantics=("parallel",),
            vmem_limit_bytes=budget),
    )(xp, prep["w1"], scale, shift, prep["w2"], prep["b2"])

    return out_p[:n, :d_out]


def init_params(key, input_dim, output_dim, hidden_dim):
    """Matches MLP._init_weights: Linear weights ~ trunc_normal(std=0.02, clipped at 2 std),
    biases = 0, BatchNorm gamma = 1, beta = 0."""
    k1, k2 = jax.random.split(key)

    def trunc_normal(k, shape, std=0.02):
        return jax.random.truncated_normal(k, -2.0, 2.0, shape, jnp.float32) * std

    # PyTorch Linear stores weight as (out, in); kernel wants (in, out) -> transpose here.
    w1 = trunc_normal(k1, (hidden_dim, input_dim)).T
    b1 = jnp.zeros((1, hidden_dim), jnp.float32)
    gamma = jnp.ones((1, hidden_dim), jnp.float32)
    beta = jnp.zeros((1, hidden_dim), jnp.float32)
    w2 = trunc_normal(k2, (output_dim, hidden_dim)).T
    b2 = jnp.zeros((1, output_dim), jnp.float32)

    return {"w1": w1, "b1": b1, "gamma": gamma, "beta": beta, "w2": w2, "b2": b2}


def _reference(x, params):
    """Pure-JAX f32 reference of the PyTorch forward (train-mode BN)."""
    h = x @ params["w1"] + params["b1"]
    mean = jnp.mean(h, axis=0, keepdims=True)
    var = jnp.mean((h - mean) ** 2, axis=0, keepdims=True)
    h = (h - mean) / jnp.sqrt(var + BN_EPS) * params["gamma"] + params["beta"]
    h = jnp.maximum(h, 0.0)
    y = h @ params["w2"] + params["b2"]
    norm = jnp.sqrt(jnp.sum(y * y, axis=-1, keepdims=True))
    return y / jnp.maximum(norm, L2_EPS)


if __name__ == "__main__":
    batch, input_dim, hidden_dim, output_dim = 8, 32, 32, 16

    key = jax.random.PRNGKey(0)
    k_x, k_p = jax.random.split(key)
    x = jax.random.normal(k_x, (batch, input_dim), jnp.float32)
    params = init_params(k_p, input_dim, output_dim, hidden_dim)
    prep = prepare_params(params)   # pad + bf16-cast weights once, not per call

    out = jax.block_until_ready(mlp_forward(x, prep))

    assert out.shape == (batch, output_dim)
    assert bool(jnp.all(jnp.isfinite(out)))
    ref = _reference(x, params)
    # bf16 MXU feeds (f32 accumulation) -> compare to the f32 reference at bf16-level tol.
    max_err = float(jnp.max(jnp.abs(out - ref)))
    assert bool(jnp.allclose(out, ref, atol=3e-2, rtol=3e-2)), max_err
    print("KERNEL_OK")
</pallas_src>

<mosaic_0001>
module attributes {stable_mosaic.version = 11 : i64} {
  func.func @_stats_kernel(%arg0: i32, %arg1: memref<8x128xbf16, #tpu.memory_space<vmem>>, %arg2: memref<128x128xbf16, #tpu.memory_space<vmem>>, %arg3: memref<1x1x128xf32, #tpu.memory_space<vmem>>, %arg4: memref<1x1x128xf32, #tpu.memory_space<vmem>>) attributes {dimension_semantics = [#tpu.dimension_semantics<parallel>], iteration_bounds = array<i64: 1>, scalar_prefetch = 0 : i64, scratch_operands = 0 : i64, tpu.core_type = #tpu.core_type<tc>, window_params = [{transform_indices = @transform_0, window_bounds = array<i64: 8, 128>}, {pipeline_mode = #tpu.pipeline_mode<synchronous>, transform_indices = @transform_1, window_bounds = array<i64: 128, 128>}, {transform_indices = @transform_2, window_bounds = array<i64: 1, 1, 128>}, {transform_indices = @transform_3, window_bounds = array<i64: 1, 1, 128>}]} {
    %c0 = arith.constant 0 : index
    %c0_0 = arith.constant 0 : index
    %0 = vector.load %arg1[%c0, %c0_0] : memref<8x128xbf16, #tpu.memory_space<vmem>>, vector<8x128xbf16>
    %c0_1 = arith.constant 0 : index
    %c0_2 = arith.constant 0 : index
    %1 = vector.load %arg2[%c0_1, %c0_2] : memref<128x128xbf16, #tpu.memory_space<vmem>>, vector<128x128xbf16>
    %cst = arith.constant dense<0.000000e+00> : vector<8x128xf32>
    %2 = tpu.matmul %0, %1, %cst {dimension_numbers = #tpu.dot_dimension_numbers<[1], [0], [0], [1], [0, 0, 1, 1], [], []>} : vector<8x128xbf16>, vector<128x128xbf16>, vector<8x128xf32> -> vector<8x128xf32>
    %c8_i32 = arith.constant 8 : i32
    %3 = arith.muli %arg0, %c8_i32 : i32
    %4 = tpu.iota {dimensions = array<i32: 0>} : vector<8x1xi32>
    %5 = vector.broadcast %3 : i32 to vector<8x1xi32>
    %6 = arith.addi %5, %4 : vector<8x1xi32>
    %c8_i32_3 = arith.constant 8 : i32
    %7 = vector.broadcast %c8_i32_3 : i32 to vector<8x1xi32>
    %8 = arith.cmpi slt, %6, %7 : vector<8x1xi32>
    %cst_4 = arith.constant 0.000000e+00 : f32
    %9 = vector.shape_cast %8 : vector<8x1xi1> to vector<8x1xi1>
    %10 = vector.broadcast %9 : vector<8x1xi1> to vector<8x128xi1>
    %11 = vector.broadcast %cst_4 : f32 to vector<8x128xf32>
    %12 = arith.select %10, %2, %11 : vector<8x128xi1>, vector<8x128xf32>
    %cst_5 = arith.constant 1.000000e+00 : f32
    %13 = vector.broadcast %cst_5 : f32 to vector<1x8xf32>
    %cst_6 = arith.constant dense<0.000000e+00> : vector<1x128xf32>
    %14 = tpu.matmul %13, %12, %cst_6 {dimension_numbers = #tpu.dot_dimension_numbers<[1], [0], [0], [1], [0, 0, 1, 1], [], []>} : vector<1x8xf32>, vector<8x128xf32>, vector<1x128xf32> -> vector<1x128xf32>
    %15 = vector.shape_cast %14 : vector<1x128xf32> to vector<1x1x128xf32>
    %c0_7 = arith.constant 0 : index
    %c0_8 = arith.constant 0 : index
    %c0_9 = arith.constant 0 : index
    %16 = vector.load %arg3[%c0_7, %c0_8, %c0_9] : memref<1x1x128xf32, #tpu.memory_space<vmem>>, vector<1x1x128xf32>
    tpu.vector_store %arg3[%c0_7, %c0_8, %c0_9], %15 {strides = array<i32>} : memref<1x1x128xf32, #tpu.memory_space<vmem>>, vector<1x1x128xf32>,
    %17 = arith.mulf %12, %12 : vector<8x128xf32>
    %cst_10 = arith.constant dense<0.000000e+00> : vector<1x128xf32>
    %18 = tpu.matmul %13, %17, %cst_10 {dimension_numbers = #tpu.dot_dimension_numbers<[1], [0], [0], [1], [0, 0, 1, 1], [], []>} : vector<1x8xf32>, vector<8x128xf32>, vector<1x128xf32> -> vector<1x128xf32>
    %19 = vector.shape_cast %18 : vector<1x128xf32> to vector<1x1x128xf32>
    %c0_11 = arith.constant 0 : index
    %c0_12 = arith.constant 0 : index
    %c0_13 = arith.constant 0 : index
    %20 = vector.load %arg4[%c0_11, %c0_12, %c0_13] : memref<1x1x128xf32, #tpu.memory_space<vmem>>, vector<1x1x128xf32>
    tpu.vector_store %arg4[%c0_11, %c0_12, %c0_13], %19 {strides = array<i32>} : memref<1x1x128xf32, #tpu.memory_space<vmem>>, vector<1x1x128xf32>,
    return
  }
  func.func @transform_0(%arg0: i32) -> (i32, i32) {
    %c0_i32 = arith.constant 0 : i32
    %c0_i32_0 = arith.constant 0 : i32
    return %arg0, %c0_i32 : i32, i32
  }
  func.func @transform_1(%arg0: i32) -> (i32, i32) {
    %c0_i32 = arith.constant 0 : i32
    %c0_i32_0 = arith.constant 0 : i32
    %c0_i32_1 = arith.constant 0 : i32
    return %c0_i32, %c0_i32_0 : i32, i32
  }
  func.func @transform_2(%arg0: i32) -> (i32, i32, i32) {
    %c0_i32 = arith.constant 0 : i32
    %c0_i32_0 = arith.constant 0 : i32
    %c0_i32_1 = arith.constant 0 : i32
    return %arg0, %c0_i32, %c0_i32_0 : i32, i32, i32
  }
  func.func @transform_3(%arg0: i32) -> (i32, i32, i32) {
    %c0_i32 = arith.constant 0 : i32
    %c0_i32_0 = arith.constant 0 : i32
    %c0_i32_1 = arith.constant 0 : i32
    return %arg0, %c0_i32, %c0_i32_0 : i32, i32, i32
  }
}

</mosaic_0001>

<bundles_post_ra>
// kernel: tpu_custom_call.1
= control target key start
LH: loop header
LB: loop body
LE: loop exit
PB: predicated region body
PF: predicated region fallthrough
CT: control target
= control target key end

     0   :  { %9 = vsyncpa [#allocation3], 0  ;;  %s586_s0 = inlined_call_operand.hbm [shape: bf16[8,128], index: 0, kind: input, shape index: {}]   ;;  %s587_s1 = inlined_call_operand.hbm [shape: bf16[128,128], index: 1, kind: input, shape index: {}]   ;;  %s588_s2 = inlined_call_operand.hbm [shape: f32[1,1,128], index: 2, kind: output, shape index: {0}]   ;;  %s589_s3 = inlined_call_operand.hbm [shape: f32[1,1,128], index: 3, kind: output, shape index: {1}]  }
   0x1   :  { %10 = vsyncpa [#allocation6], 0 }
   0x2   :  { %11 = vsyncpa [#allocation4], 0 }
   0x3   :  { %12 = vsyncpa [#allocation9], 0  ;;  %s499_s12 = smov [#allocation2]   ;;  %s500_s14 = smov [#allocation5]  }
   0x4   :  { %s19_s13 = sshll.u32 %s499_s12, 4  ;;  %s28_s15 = sshll.u32 %s500_s14, 4  ;;  %s20_s13 = int_to_ptr.vmem [resolvable:$true] %s19_s13  ;;  %s528_s15 = int_to_ptr.vmem [resolvable:$true] %s28_s15 }
   0x5   :  { %s403_s18 = scalar_lea.hbm %s586_s0, 64 }
   0x6   :  { %p404_p0 = scmp.ne.s32.totalorder %s586_s0, %s403_s18  ;;  %p407_p1 = scmp.lt.u32.totalorder %s403_s18, %s586_s0 }
   0x8   :  { %p409_p2 = pnand %p407_p1, %p404_p0 }
   0xa   :  { %412 = shalt.err (!%p409_p2)
}
   0xb   :  { %s413_s23 = scalar_lea.vmem %s20_s13, 64  ;;  %p418_p4 = scmp.lt.s32.totalorder %s20_s13, %s20_s13 }
   0xc   :  { %p414_p3 = scmp.ne.s32.totalorder %s20_s13, %s413_s23  ;;  %p419_p5 = scmp.lt.s32.totalorder %s413_s23, %s413_s23 }
   0xe   :  { %p420_p6 = por %p419_p5, %p418_p4 }
  0x10   :  { %p421_p7 = pnand %p420_p6, %p414_p3 }
  0x12   :  { %424 = shalt.err (!%p421_p7)
}
  0x13   :  { %22 = dma.hbm_to_vmem [thread:$0]  %s586_s0, 64, %s20_s13, [#allocation3]  }
  0x14   :  { %s425_s28 = scalar_lea.hbm %s587_s1, 1024 }
  0x15   :  { %p426_p8 = scmp.ne.s32.totalorder %s587_s1, %s425_s28  ;;  %p429_p9 = scmp.lt.u32.totalorder %s425_s28, %s587_s1 }
  0x17   :  { %p431_p10 = pnand %p429_p9, %p426_p8 }
  0x19   :  { %434 = shalt.err (!%p431_p10)
}
  0x1a   :  { %s435_s6 = scalar_lea.vmem %s528_s15, 1024  ;;  %p440_p12 = scmp.lt.s32.totalorder %s528_s15, %s528_s15 }
  0x1b   :  { %p436_p11 = scmp.ne.s32.totalorder %s528_s15, %s435_s6  ;;  %p441_p13 = scmp.lt.s32.totalorder %s435_s6, %s435_s6 }
  0x1d   :  { %p442_p0 = por %p441_p13, %p440_p12 }
  0x1f   :  { %p443_p1 = pnand %p442_p0, %p436_p11 }
  0x21   :  { %446 = shalt.err (!%p443_p1)
}
  0x22   :  { %s501_s0 = smov 64   ;;  %s502_s7 = smov 4  }
  0x23   :  { %34 = dma.hbm_to_vmem [thread:$0]  %s587_s1, 1024, %s528_s15, [#allocation6], %s501_s0, %s501_s0, %s502_s7  }
  0x24   :  { %491 = dma.done.wait [#allocation3], 64  }
  0x25   :  { %492 = vsyncadd [#allocation3], 4294967232 }
  0x26   :  { %493 = dma.done.wait [#allocation6], 1024  }
  0x27   :  { %494 = vsyncadd [#allocation6], 4294966272  ;;  %v503_v0 = vmov 0.0   ;;  %vm504_vm0 = vmmov 0   ;;  %v395_v1 = vld [vmem:[#allocation5] sm:$0xff]   ;;  %v396_v2 = vld [vmem:[#allocation5 + $0x8] sm:$0xff]  }
  0x28   :  { %356 = vmatprep.subr.bf16.mxu0 %v503_v0  ;;  %372 = vmatprep.mubr.msk.bf16.mxu0 %vm504_vm0, %v503_v0  ;;  %v397_v3 = vld [vmem:[#allocation5 + $0x10] sm:$0xff]   ;;  %v398_v4 = vld [vmem:[#allocation5 + $0x18] sm:$0xff]   ;;  %v399_v5 = vld [vmem:[#allocation5 + $0x20] sm:$0xff]   ;;  %vm156_vm1 = vcmask 64512   ;;  %v505_v14 = vmov 1.0   ;;  %s506_s1 = smov [#allocation7]  }
  0x29   :  { %376 = vmatprep.subr.mxu1 %v503_v0  ;;  %378 = vmatprep.mubr.msk.f32.mxu1 %vm504_vm0, %v503_v0  ;;  %v400_v6 = vld [vmem:[#allocation5 + $0x28] sm:$0xff]   ;;  %v401_v7 = vld [vmem:[#allocation5 + $0x30] sm:$0xff]   ;;  %v402_v8 = vld [vmem:[#allocation5 + $0x38] sm:$0xff]   ;;  %s309_s10 = sshll.u32 %s506_s1, 4  ;;  %s507_s11 = smov [#allocation8]   ;;  %s310_s10 = int_to_ptr.vmem [resolvable:$true] %s309_s10 }
  0x2a   :  { %357 = vmatpush3.bf16.msra.mxu0 %v395_v1  ;;  %v42_v9 = vld [vmem:[#allocation2] sm:$0xf]  ;;  %s319_s12 = sshll.u32 %s507_s11, 4  ;;  %s447_s13 = scalar_lea.vmem %s310_s10, 16  ;;  %s320_s12 = int_to_ptr.vmem [resolvable:$true] %s319_s12 }
  0x2b   :  { %358 = vmatprep.subr.bf16.mxu0 %v503_v0  ;;  %p448_p2 = scmp.ne.s32.totalorder %s310_s10, %s447_s13  ;;  %s451_s14 = scalar_lea.vmem %s310_s10, 32 }
  0x2c   :  { %p452_p3 = scmp.lt.s32.totalorder %s310_s10, %s310_s10  ;;  %p453_p4 = scmp.lt.s32.totalorder %s451_s14, %s447_s13 }
  0x2e   :  { %359 = vmatpush3.bf16.msra.mxu0 %v396_v2  ;;  %p454_p5 = por %p453_p4, %p452_p3 }
  0x2f   :  { %360 = vmatprep.subr.bf16.mxu0 %v503_v0 }
  0x30   :  { %p455_p6 = pnand %p454_p5, %p448_p2 }
  0x32   :  { %361 = vmatpush3.bf16.msra.mxu0 %v397_v3 }
  0x33   :  { %362 = vmatprep.subr.bf16.mxu0 %v503_v0 }
  0x36   :  { %363 = vmatpush3.bf16.msra.mxu0 %v398_v4 }
  0x37   :  { %364 = vmatprep.subr.bf16.mxu0 %v503_v0 }
  0x3a   :  { %365 = vmatpush3.bf16.msra.mxu0 %v399_v5 }
  0x3b   :  { %366 = vmatprep.subr.bf16.mxu0 %v503_v0 }
  0x3e   :  { %367 = vmatpush3.bf16.msra.mxu0 %v400_v6 }
  0x3f   :  { %368 = vmatprep.subr.bf16.mxu0 %v503_v0 }
  0x42   :  { %369 = vmatpush3.bf16.msra.mxu0 %v401_v7 }
  0x43   :  { %370 = vmatprep.subr.bf16.mxu0 %v503_v0 }
  0x46   :  { %371 = vmatpush3.bf16.msra.mxu0 %v402_v8 }
  0x49   :  { %373 = vmatmul.mubr.bf16.vlgmr.msra.gmra.mrb[0].mxu0 %v42_v9 }
 0x11c   :  { %v141_v10 = vpop.f32.mrb[0].mxu0 }
 0x11d   :  { %v231_v11 = vmul.f32 %v141_v10, %v141_v10  ;;  %v374_v12 = vpop.f32.mrb[1].mxu0  ;;  %377 = vmatpush3.msra.mxu1 %v141_v10 }
 0x11e   :  { %v144_v13 = vpop.f32.mrb[2].mxu0  ;;  %379 = vmatmul.mubr.msk.f32.vlgmr.msra.gmra.mrb[0].mxu1 %vm156_vm1, %v505_v14  ;;  %381 = vmatprep.subr.mxu1 %v503_v0 }
 0x11f   :  { %v375_v15 = vpop.f32.mrb[3].mxu0  ;;  %382 = vmatpush3.msra.mxu1 %v231_v11  ;;  %383 = vmatprep.mubr.msk.f32.mxu1 %vm504_vm0, %v503_v0 }
 0x122   :  { %384 = vmatmul.mubr.msk.f32.vlgmr.msra.gmra.mrb[2].mxu1 %vm156_vm1, %v505_v14 }
 0x1f1   :  { %v226_v16 = vpop.f32.mrb[0].mxu1 }
 0x1f2   :  { %230 = vst [vmem:[#allocation7] sm:$0x1] %v226_v16  ;;  %v380_v17 = vpop.f32.mrb[1].mxu1 }
 0x1f3   :  { %458 = shalt.err (!%p455_p6)
}
 0x1f4   :  { %s459_s17 = scalar_lea.hbm %s588_s2, 16 }
 0x1f5   :  { %p460_p7 = scmp.ne.s32.totalorder %s588_s2, %s459_s17  ;;  %p463_p8 = scmp.lt.u32.totalorder %s459_s17, %s588_s2 }
 0x1f7   :  { %p465_p9 = pnand %p463_p8, %p460_p7 }
 0x1f9   :  { %468 = shalt.err (!%p465_p9)
}
 0x1fa   :  { %312 = dma.vmem_to_hbm [thread:$0]  %s310_s10, 16, %s588_s2, [#allocation4]   ;;  %v298_v18 = vpop.f32.mrb[2].mxu1 }
 0x1fb   :  { %302 = vst [vmem:[#allocation8] sm:$0x1] %v298_v18  ;;  %v385_v19 = vpop.f32.mrb[3].mxu1  ;;  %s469_s24 = scalar_lea.vmem %s320_s12, 16  ;;  %s473_s25 = scalar_lea.vmem %s320_s12, 32 }
 0x1fc   :  { %p470_p10 = scmp.ne.s32.totalorder %s320_s12, %s469_s24  ;;  %p474_p11 = scmp.lt.s32.totalorder %s320_s12, %s320_s12 }
 0x1fd   :  { %p475_p12 = scmp.lt.s32.totalorder %s473_s25, %s469_s24 }
 0x1ff   :  { %p476_p13 = por %p475_p12, %p474_p11 }
 0x201   :  { %p477_p0 = pnand %p476_p13, %p470_p10 }
 0x203   :  { %480 = shalt.err (!%p477_p0)
}
 0x204   :  { %s481_s28 = scalar_lea.hbm %s589_s3, 16 }
 0x205   :  { %p482_p1 = scmp.ne.s32.totalorder %s589_s3, %s481_s28  ;;  %p485_p2 = scmp.lt.u32.totalorder %s481_s28, %s589_s3 }
 0x207   :  { %p487_p3 = pnand %p485_p2, %p482_p1 }
 0x209   :  { %490 = shalt.err (!%p487_p3)
}
 0x20a   :  { %322 = dma.vmem_to_hbm [thread:$0]  %s320_s12, 16, %s589_s3, [#allocation9]  }
 0x20b   :  { %495 = dma.done.wait [#allocation4], 16  }
 0x20c   :  { %496 = vsyncadd [#allocation4], 4294967280 }
 0x20d   :  { %497 = dma.done.wait [#allocation9], 16  }
 0x20e   :  { %498 = vsyncadd [#allocation9], 4294967280 }
 0x20f   :  { %329 = vsyncpa [#allocation3], 1 }
 0x210   :  { %330 = vsyncpa [#allocation6], 1 }
 0x211   :  { %331 = vsyncpa [#allocation4], 1 }
 0x212   :  { %332 = vsyncpa [#allocation9], 1 }

</bundles_post_ra>
